<compile_context>
chip_gen: v5e
topology: v5e:2x2
jax: 0.10.0
libtpu: 0.0.40
codegen_flags: <defaults>
</compile_context>

<pallas_src>
import jax
import jax.numpy as jnp
from jax.experimental import pallas as pl
from jax.experimental.pallas import tpu as pltpu


STATE_DIM = 6      # Acrobot-v1 observation space
ACTION_DIM = 3     # Acrobot-v1 action space
H1 = 64
H2 = 128
K1_PAD = 8         # layer-1 contraction dim padded 6 -> 8 (full sublane)
OUT_PAD = 8        # padded Q-value width (last dim == full array dim)


def _dqn_kernel(x_ref, w1_ref, b1_ref, w2_ref, b2_ref, w3_ref, b3_ref, o_ref):
    # ---- Layer 1: small f32 MXU matmul (K padded to 8), bias + ReLU on VPU ----
    h1 = jnp.dot(x_ref[...], w1_ref[...], preferred_element_type=jnp.float32)
    h1 = jnp.maximum(h1 + b1_ref[...], 0.0)

    # ---- Layer 2: bf16 MXU matmul, f32 accumulate; bias + ReLU in f32 ----
    h2 = jnp.dot(h1.astype(jnp.bfloat16), w2_ref[...],
                 preferred_element_type=jnp.float32)
    h2 = jnp.maximum(h2 + b2_ref[...], 0.0)

    # ---- Layer 3: bf16 MXU matmul into the narrow (TB, 8) padded Q slab ----
    q = jnp.dot(h2.astype(jnp.bfloat16), w3_ref[...],
                preferred_element_type=jnp.float32)
    o_ref[...] = (q + b3_ref[...]).astype(o_ref.dtype)
    # TODO(synk): optional fused argmax epilogue (int32 action output) for the
    # action-selection path would eliminate nearly all remaining writeback.


def prepare_params(params):
    """One-time weight prep (casts + zero-padding) hoisted out of the per-call
    path. params: dict of PyTorch-style Linear weights (in, out) / biases."""
    w1 = jnp.zeros((K1_PAD, H1), jnp.float32).at[:STATE_DIM, :].set(
        params["w1"].astype(jnp.float32))
    b1 = params["b1"].astype(jnp.float32).reshape(1, H1)
    w2 = params["w2"].astype(jnp.bfloat16)
    b2 = params["b2"].astype(jnp.float32).reshape(1, H2)
    w3 = jnp.zeros((H2, OUT_PAD), jnp.bfloat16).at[:, :ACTION_DIM].set(
        params["w3"].astype(jnp.bfloat16))
    b3 = jnp.zeros((1, OUT_PAD), jnp.float32).at[:, :ACTION_DIM].set(
        params["b3"].astype(jnp.float32))
    return {"w1": w1, "b1": b1, "w2": w2, "b2": b2, "w3": w3, "b3": b3}


def _choose_tiling(B, tile_b):
    """Pick (tile_b, padded_b) with tile_b | padded_b, tile_b % 8 == 0."""
    if tile_b is not None:
        tile_b = max(8, -(-tile_b // 8) * 8)
        return tile_b, -(-B // tile_b) * tile_b
    pb8 = max(8, -(-B // 8) * 8)            # batch padded to a multiple of 8
    if pb8 >= 16:
        # Cap at padded_b // 2 so the grid has >= 2 steps (v7x: 2 TCs), and at
        # 1024 rows (mem-bound roofline plateau; ~1 MiB of VMEM per buffer).
        tile_b = max(8, (min(1024, pb8 // 2) // 8) * 8)
    else:
        tile_b = 8
    return tile_b, -(-pb8 // tile_b) * tile_b


def dqn_forward(x, prepped, *, tile_b=None):
    """x: (B, STATE_DIM) float. prepped: output of prepare_params()."""
    B = x.shape[0]
    tile_b, padded_b = _choose_tiling(B, tile_b)

    # Pad rows to the grid and columns 6 -> 8 (matches the padded w1).
    x = jnp.pad(x.astype(jnp.float32),
                ((0, padded_b - B), (0, K1_PAD - STATE_DIM)))

    grid = (padded_b // tile_b,)
    resident = lambda i: (0, 0)   # weights/biases: same block -> stay in VMEM

    out = pl.pallas_call(
        _dqn_kernel,
        out_shape=jax.ShapeDtypeStruct((padded_b, OUT_PAD), jnp.float32),
        grid=grid,
        in_specs=[
            pl.BlockSpec((tile_b, K1_PAD), lambda i: (i, 0)),   # x rows
            pl.BlockSpec((K1_PAD, H1), resident),               # w1 (padded K)
            pl.BlockSpec((1, H1), resident),                    # b1
            pl.BlockSpec((H1, H2), resident),                   # w2 (bf16)
            pl.BlockSpec((1, H2), resident),                    # b2
            pl.BlockSpec((H2, OUT_PAD), resident),              # w3 (bf16, 8 cols)
            pl.BlockSpec((1, OUT_PAD), resident),               # b3 (8 cols)
        ],
        out_specs=pl.BlockSpec((tile_b, OUT_PAD), lambda i: (i, 0)),
        compiler_params=pltpu.CompilerParams(
            dimension_semantics=("parallel",)),                 # v7x: 2 TCs
    )(x, prepped["w1"], prepped["b1"], prepped["w2"], prepped["b2"],
      prepped["w3"], prepped["b3"])

    # TODO(synk): for the B~8 action-selection loop, pin weights across calls
    # (P10 cross-call prefetch) or batch several env states per invocation.
    return out[:B, :ACTION_DIM]


def init_params(key):
    """PyTorch nn.Linear default init: U(-1/sqrt(fan_in), 1/sqrt(fan_in))."""
    def linear_init(k, fan_in, fan_out):
        kw, kb = jax.random.split(k)
        bound = 1.0 / jnp.sqrt(jnp.float32(fan_in))
        w = jax.random.uniform(kw, (fan_in, fan_out), jnp.float32, -bound, bound)
        b = jax.random.uniform(kb, (1, fan_out), jnp.float32, -bound, bound)
        return w, b

    k1, k2, k3 = jax.random.split(key, 3)
    w1, b1 = linear_init(k1, STATE_DIM, H1)
    w2, b2 = linear_init(k2, H1, H2)
    w3, b3 = linear_init(k3, H2, ACTION_DIM)
    return {"w1": w1, "b1": b1, "w2": w2, "b2": b2, "w3": w3, "b3": b3}


def dqn_reference(x, p):
    h1 = jnp.maximum(x @ p["w1"] + p["b1"], 0.0)
    h2 = jnp.maximum(h1 @ p["w2"] + p["b2"], 0.0)
    return h2 @ p["w3"] + p["b3"]


if __name__ == "__main__":
    key = jax.random.PRNGKey(0)
    kp, kx = jax.random.split(key)

    params = init_params(kp)
    prepped = prepare_params(params)   # one-time weight prep (bf16 cast + pad)

    B = 8
    x = jax.random.normal(kx, (B, STATE_DIM), jnp.float32)

    out = dqn_forward(x, prepped)
    out = jax.block_until_ready(out)

    # Correctness check vs. the pure-f32 JAX reference. Tolerance is loosened
    # because layers 2/3 use bf16 MXU operands (f32 accumulation).
    ref = dqn_reference(x, params)
    assert out.shape == (B, ACTION_DIM)
    assert jnp.allclose(out, ref, atol=3e-2, rtol=3e-2), "mismatch vs reference"

    print("KERNEL_OK")
</pallas_src>

<mosaic_0001>
module attributes {stable_mosaic.version = 11 : i64} {
  func.func @_dqn_kernel(%arg0: i32, %arg1: memref<8x8xf32, #tpu.memory_space<vmem>>, %arg2: memref<8x64xf32, #tpu.memory_space<vmem>>, %arg3: memref<1x64xf32, #tpu.memory_space<vmem>>, %arg4: memref<64x128xbf16, #tpu.memory_space<vmem>>, %arg5: memref<1x128xf32, #tpu.memory_space<vmem>>, %arg6: memref<128x8xbf16, #tpu.memory_space<vmem>>, %arg7: memref<1x8xf32, #tpu.memory_space<vmem>>, %arg8: memref<8x8xf32, #tpu.memory_space<vmem>>) attributes {dimension_semantics = [#tpu.dimension_semantics<parallel>], iteration_bounds = array<i64: 1>, scalar_prefetch = 0 : i64, scratch_operands = 0 : i64, tpu.core_type = #tpu.core_type<tc>, window_params = [{transform_indices = @transform_0, window_bounds = array<i64: 8, 8>}, {pipeline_mode = #tpu.pipeline_mode<synchronous>, transform_indices = @transform_1, window_bounds = array<i64: 8, 64>}, {pipeline_mode = #tpu.pipeline_mode<synchronous>, transform_indices = @transform_2, window_bounds = array<i64: 1, 64>}, {pipeline_mode = #tpu.pipeline_mode<synchronous>, transform_indices = @transform_3, window_bounds = array<i64: 64, 128>}, {pipeline_mode = #tpu.pipeline_mode<synchronous>, transform_indices = @transform_4, window_bounds = array<i64: 1, 128>}, {pipeline_mode = #tpu.pipeline_mode<synchronous>, transform_indices = @transform_5, window_bounds = array<i64: 128, 8>}, {pipeline_mode = #tpu.pipeline_mode<synchronous>, transform_indices = @transform_6, window_bounds = array<i64: 1, 8>}, {transform_indices = @transform_7, window_bounds = array<i64: 8, 8>}]} {
    %c0 = arith.constant 0 : index
    %c0_0 = arith.constant 0 : index
    %0 = vector.load %arg1[%c0, %c0_0] : memref<8x8xf32, #tpu.memory_space<vmem>>, vector<8x8xf32>
    %c0_1 = arith.constant 0 : index
    %c0_2 = arith.constant 0 : index
    %1 = vector.load %arg2[%c0_1, %c0_2] : memref<8x64xf32, #tpu.memory_space<vmem>>, vector<8x64xf32>
    %cst = arith.constant dense<0.000000e+00> : vector<8x64xf32>
    %2 = tpu.matmul %0, %1, %cst {dimension_numbers = #tpu.dot_dimension_numbers<[1], [0], [0], [1], [0, 0, 1, 1], [], []>} : vector<8x8xf32>, vector<8x64xf32>, vector<8x64xf32> -> vector<8x64xf32>
    %c0_3 = arith.constant 0 : index
    %c0_4 = arith.constant 0 : index
    %3 = vector.load %arg3[%c0_3, %c0_4] : memref<1x64xf32, #tpu.memory_space<vmem>>, vector<1x64xf32>
    %4 = vector.broadcast %3 : vector<1x64xf32> to vector<8x64xf32>
    %5 = arith.addf %2, %4 : vector<8x64xf32>
    %cst_5 = arith.constant 0.000000e+00 : f32
    %6 = vector.broadcast %cst_5 : f32 to vector<8x64xf32>
    %7 = arith.maximumf %5, %6 : vector<8x64xf32>
    %8 = arith.truncf %7 : vector<8x64xf32> to vector<8x64xbf16>
    %c0_6 = arith.constant 0 : index
    %c0_7 = arith.constant 0 : index
    %9 = vector.load %arg4[%c0_6, %c0_7] : memref<64x128xbf16, #tpu.memory_space<vmem>>, vector<64x128xbf16>
    %cst_8 = arith.constant dense<0.000000e+00> : vector<8x128xf32>
    %10 = tpu.matmul %8, %9, %cst_8 {dimension_numbers = #tpu.dot_dimension_numbers<[1], [0], [0], [1], [0, 0, 1, 1], [], []>} : vector<8x64xbf16>, vector<64x128xbf16>, vector<8x128xf32> -> vector<8x128xf32>
    %c0_9 = arith.constant 0 : index
    %c0_10 = arith.constant 0 : index
    %11 = vector.load %arg5[%c0_9, %c0_10] : memref<1x128xf32, #tpu.memory_space<vmem>>, vector<1x128xf32>
    %12 = vector.broadcast %11 : vector<1x128xf32> to vector<8x128xf32>
    %13 = arith.addf %10, %12 : vector<8x128xf32>
    %cst_11 = arith.constant 0.000000e+00 : f32
    %14 = vector.broadcast %cst_11 : f32 to vector<8x128xf32>
    %15 = arith.maximumf %13, %14 : vector<8x128xf32>
    %16 = arith.truncf %15 : vector<8x128xf32> to vector<8x128xbf16>
    %c0_12 = arith.constant 0 : index
    %c0_13 = arith.constant 0 : index
    %17 = vector.load %arg6[%c0_12, %c0_13] : memref<128x8xbf16, #tpu.memory_space<vmem>>, vector<128x8xbf16>
    %cst_14 = arith.constant dense<0.000000e+00> : vector<8x8xf32>
    %18 = tpu.matmul %16, %17, %cst_14 {dimension_numbers = #tpu.dot_dimension_numbers<[1], [0], [0], [1], [0, 0, 1, 1], [], []>} : vector<8x128xbf16>, vector<128x8xbf16>, vector<8x8xf32> -> vector<8x8xf32>
    %c0_15 = arith.constant 0 : index
    %c0_16 = arith.constant 0 : index
    %19 = vector.load %arg7[%c0_15, %c0_16] : memref<1x8xf32, #tpu.memory_space<vmem>>, vector<1x8xf32>
    %20 = vector.broadcast %19 : vector<1x8xf32> to vector<8x8xf32>
    %21 = arith.addf %18, %20 : vector<8x8xf32>
    %c0_17 = arith.constant 0 : index
    %c0_18 = arith.constant 0 : index
    %22 = vector.load %arg8[%c0_17, %c0_18] : memref<8x8xf32, #tpu.memory_space<vmem>>, vector<8x8xf32>
    tpu.vector_store %arg8[%c0_17, %c0_18], %21 {strides = array<i32>} : memref<8x8xf32, #tpu.memory_space<vmem>>, vector<8x8xf32>,
    return
  }
  func.func @transform_0(%arg0: i32) -> (i32, i32) {
    %c0_i32 = arith.constant 0 : i32
    %c0_i32_0 = arith.constant 0 : i32
    return %arg0, %c0_i32 : i32, i32
  }
  func.func @transform_1(%arg0: i32) -> (i32, i32) {
    %c0_i32 = arith.constant 0 : i32
    %c0_i32_0 = arith.constant 0 : i32
    %c0_i32_1 = arith.constant 0 : i32
    return %c0_i32, %c0_i32_0 : i32, i32
  }
  func.func @transform_2(%arg0: i32) -> (i32, i32) {
    %c0_i32 = arith.constant 0 : i32
    %c0_i32_0 = arith.constant 0 : i32
    %c0_i32_1 = arith.constant 0 : i32
    return %c0_i32, %c0_i32_0 : i32, i32
  }
  func.func @transform_3(%arg0: i32) -> (i32, i32) {
    %c0_i32 = arith.constant 0 : i32
    %c0_i32_0 = arith.constant 0 : i32
    %c0_i32_1 = arith.constant 0 : i32
    return %c0_i32, %c0_i32_0 : i32, i32
  }
  func.func @transform_4(%arg0: i32) -> (i32, i32) {
    %c0_i32 = arith.constant 0 : i32
    %c0_i32_0 = arith.constant 0 : i32
    %c0_i32_1 = arith.constant 0 : i32
    return %c0_i32, %c0_i32_0 : i32, i32
  }
  func.func @transform_5(%arg0: i32) -> (i32, i32) {
    %c0_i32 = arith.constant 0 : i32
    %c0_i32_0 = arith.constant 0 : i32
    %c0_i32_1 = arith.constant 0 : i32
    return %c0_i32, %c0_i32_0 : i32, i32
  }
  func.func @transform_6(%arg0: i32) -> (i32, i32) {
    %c0_i32 = arith.constant 0 : i32
    %c0_i32_0 = arith.constant 0 : i32
    %c0_i32_1 = arith.constant 0 : i32
    return %c0_i32, %c0_i32_0 : i32, i32
  }
  func.func @transform_7(%arg0: i32) -> (i32, i32) {
    %c0_i32 = arith.constant 0 : i32
    %c0_i32_0 = arith.constant 0 : i32
    return %arg0, %c0_i32 : i32, i32
  }
}

</mosaic_0001>

<bundles_post_ra>
// kernel: tpu_custom_call.1
= control target key start
LH: loop header
LB: loop body
LE: loop exit
PB: predicated region body
PF: predicated region fallthrough
CT: control target
= control target key end

     0   :  { %vm34_vm0 = vcmask 64512   ;;  %s402_s0 = inlined_call_operand.vmem [shape: f32[8,8], index: 0, kind: input, shape index: {}]   ;;  %s403_s1 = inlined_call_operand.vmem [shape: f32[8,64], index: 1, kind: input, shape index: {}]   ;;  %s404_s2 = inlined_call_operand.vmem [shape: f32[1,64], index: 2, kind: input, shape index: {}]   ;;  %s405_s3 = inlined_call_operand.vmem [shape: bf16[64,128], index: 3, kind: input, shape index: {}]   ;;  %s406_s4 = inlined_call_operand.vmem [shape: f32[1,128], index: 4, kind: input, shape index: {}]   ;;  %s407_s5 = inlined_call_operand.vmem [shape: bf16[128,8], index: 5, kind: input, shape index: {}]   ;;  %s408_s6 = inlined_call_operand.vmem [shape: f32[1,8], index: 6, kind: input, shape index: {}]   ;;  %s409_s7 = inlined_call_operand.hbm [shape: f32[8,8], index: 7, kind: output, shape index: {}]  }
   0x1   :  { %v29_v0 = vld [vmem:[%s403_s1] sm:$0xff]  ;;  %v266_v2 = vld [vmem:[%s405_s3 + $0x18] sm:$0xff]  ;;  %v265_v3 = vld [vmem:[%s405_s3 + $0x10] sm:$0xff] }
   0x2   :  { %v28_v1 = vld [vmem:[%s402_s0] sm:$0xff]  ;;  %53 = vmatpush.msra.mxu0 %v29_v0  ;;  %104 = vmatpush.bf16.msra.mxu1 %v266_v2 }
   0x3   :  { %213 = vmatmul.msk.f32.vlgmr.msra.gmra.mxu0 %vm34_vm0, %v28_v1 }
   0x4   :  { %12 = vsyncpa [#allocation3], 0  ;;  %v264_v4 = vld [vmem:[%s405_s3 + $0x8] sm:$0xff]  ;;  %v263_v5 = vld [vmem:[%s405_s3] sm:$0xff]  ;;  %vm96_vm1 = vcmask 523264   ;;  %s305_s8 = smov [#allocation2]  }
   0x5   :  { %v274_v6 = vld [vmem:[%s407_s5 + $0x38] sm:$0xff]  ;;  %v273_v7 = vld [vmem:[%s407_s5 + $0x30] sm:$0xff]  ;;  %v272_v8 = vld [vmem:[%s407_s5 + $0x28] sm:$0xff]  ;;  %s202_s1 = sshll.u32 %s305_s8, 4  ;;  %s203_s1 = int_to_ptr.vmem [resolvable:$true] %s202_s1 }
   0x6   :  { %105 = vmatpush.bf16.msra.mxu1 %v265_v3  ;;  %183 = vmatpush.bf16.msra.mxu2 %v274_v6  ;;  %v271_v9 = vld [vmem:[%s407_s5 + $0x20] sm:$0xff]  ;;  %v270_v10 = vld [vmem:[%s407_s5 + $0x18] sm:$0xff]  ;;  %v269_v11 = vld [vmem:[%s407_s5 + $0x10] sm:$0xff] }
   0x7   :  { %v276_v12 = vld [vmem:[%s404_s2] ss:$0 sm:$0xff]  ;;  %v268_v17 = vld [vmem:[%s407_s5 + $0x8] sm:$0xff] }
   0x8   :  { %v267_v18 = vld [vmem:[%s407_s5] sm:$0xff]  ;;  %s204_s5 = sshll.u32 %s409_s7, 4  ;;  %s205_s5 = int_to_ptr.hbm [resolvable:$true] %s204_s5 }
   0x9   :  { %v277_v19 = vld [vmem:[%s406_s4] ss:$0 sm:$0xff] }
   0xa   :  { %106 = vmatpush.bf16.msra.mxu1 %v264_v4  ;;  %184 = vmatpush.bf16.msra.mxu2 %v273_v7  ;;  %v278_v25 = vld [vmem:[%s408_s6] ss:$0 sm:$0xff] }
   0xe   :  { %107 = vmatpush.bf16.msra.mxu1 %v263_v5  ;;  %185 = vmatpush.bf16.msra.mxu2 %v272_v8 }
  0x12   :  { %186 = vmatpush.bf16.msra.mxu2 %v271_v9 }
  0x16   :  { %187 = vmatpush.bf16.msra.mxu2 %v270_v10 }
  0x1a   :  { %188 = vmatpush.bf16.msra.mxu2 %v269_v11 }
  0x1e   :  { %189 = vmatpush.bf16.msra.mxu2 %v268_v17 }
  0x22   :  { %190 = vmatpush.bf16.msra.mxu2 %v267_v18 }
  0x80   :  { %v55_v13 = vpop.f32.mrf.mxu0 }
  0x81   :  { %v56_v14 = vadd.f32 %v276_v12, %v55_v13 }
  0x83   :  { %v58_v15 = vmax.f32 %v56_v14, 0.0 }
  0x85   :  { %v59_v16 = vpack.c.bf16 %v58_v15, %v58_v15 }
  0x87   :  { %230 = vmatmul.msk.bf16.vlgmr.msra.gmra.mxu1 %vm96_vm1, %v59_v16 }
 0x104   :  { %v109_v20 = vpop.f32.mrf.mxu1 }
 0x105   :  { %v110_v21 = vadd.f32 %v277_v19, %v109_v20 }
 0x107   :  { %v113_v22 = vmax.f32 %v110_v21, 0.0 }
 0x109   :  { %v114_v23 = vpack.c.bf16 %v113_v22, %v113_v22 }
 0x10b   :  { %191 = vmatmul.bf16.vlgmr.msra.gmra.mxu2 %v114_v23 }
 0x10c   :  { %v111_v24 = vpop.f32.mrf.mxu1 }
 0x18e   :  { %v192_v26 = vpop.f32.mrf.mxu2 }
 0x18f   :  { %v193_v27 = vadd.f32 %v278_v25, %v192_v26 }
 0x191   :  { %196 = vst.msk [vmem:[#allocation2] sm:$0xff] %vm34_vm0, %v193_v27 }
 0x192   :  { %207 = dma.vmem_to_hbm [thread:$0]  %s203_s1, 128, %s205_s5, [#allocation3]  }
 0x196   :  { %v194_v28 = vpop.f32.mrf.mxu2 }
 0x197   :  { %303 = dma.done.wait [#allocation3], 128  }
 0x198   :  { %304 = vsyncadd [#allocation3], 4294967168 }
 0x199   :  { %212 = vsyncpa [#allocation3], 1 }

</bundles_post_ra>
